<compile_context>
chip_gen: v6e
topology: v6e:2x2x1
jax: 0.10.0
libtpu: 0.0.40
codegen_flags: <defaults>
</compile_context>

<pallas_src>
import jax
import jax.numpy as jnp
from jax.experimental import pallas as pl
from jax.experimental.pallas import tpu as pltpu

NEG_SLOPE = 0.2


def _cdiv(a, b):
    return -(-a // b)


def _round_up(n, m):
    return _cdiv(n, m) * m


def _choose_tiling(B, block_b):
    """Pick (bb, b_pad, grid): pad B only to a multiple of 128, derive the tile."""
    b128 = _round_up(max(B, 1), 128)
    grid = _cdiv(b128, block_b)
    if grid == 1:
        # Enough work to feed both v7x TensorCores? Then use >= 2 grid steps.
        if b128 >= 1024:
            grid = 2
    elif grid % 2:
        grid += 1          # even step count -> clean megacore sharding on v7x
    bb = _round_up(_cdiv(b128, grid), 128)
    b_pad = grid * bb
    return bb, b_pad, grid


def _discriminator_kernel(xt_ref, w1_ref, b1_ref, w2_ref, b2_ref, w3_ref, b3_ref,
                          o_ref):
    xt = xt_ref[...]            # [D, bb]   (batch on the lane axis)
    w1 = w1_ref[...]            # [H1, D]
    d_in = xt_ref.shape[0]

    # Layer 1: Linear(D -> H1).  K = D is tiny (2) -> VPU broadcast-FMA.
    if d_in <= 16:
        h1 = w1[:, 0:1] * xt[0:1, :]
        for d in range(1, d_in):
            h1 = h1 + w1[:, d:d + 1] * xt[d:d + 1, :]
    else:  # generic fallback for wide inputs
        h1 = jnp.dot(w1, xt, preferred_element_type=jnp.float32).astype(w1.dtype)
    h1 = h1 + b1_ref[...]                              # [H1, bb]
    h1 = jnp.maximum(h1, NEG_SLOPE * h1)               # LeakyReLU (Dropout = id)

    # Layer 2: Linear(H1 -> H2) -- the 128x128 MXU matmul; f32 accumulation.
    h2 = jnp.dot(w2_ref[...], h1, preferred_element_type=jnp.float32)
    h2 = h2.astype(w2_ref.dtype) + b2_ref[...]         # bias+LeakyReLU in compute dtype
    h2 = jnp.maximum(h2, NEG_SLOPE * h2)               # [H2, bb]

    # Output layer: Linear(H2 -> 1) as an MXU contraction with a [1, H2] row;
    # keeps the result lane-dense [1, bb] and stays off the busy VPU/XLU slots.
    logits = jnp.dot(w3_ref[...], h2, preferred_element_type=jnp.float32)
    logits = logits + b3_ref[0, 0]                     # scalar bias from SMEM

    # Sigmoid via EUP tanh: sigmoid(x) = 0.5 * (tanh(x/2) + 1).
    o_ref[...] = (0.5 * jnp.tanh(0.5 * logits) + 0.5).astype(o_ref.dtype)


def discriminator_forward(x, params, *, block_b=4096, matmul_dtype=jnp.float32):
    """Discriminator forward pass with a Pallas TPU kernel.

    x: [B, input_dim] float32
    params (PyTorch [out, in] layout):
        w1 [H1, D], b1 [H1, 1], w2 [H2, H1], b2 [H2, 1], w3 [1, H2], b3 [1, 1]
    block_b: max batch-tile width along the lane axis (multiple of 128).
    matmul_dtype: compute dtype for weights/activations (jnp.bfloat16 = v6e/v7x
        fast path; accumulation, logits and sigmoid are always f32).
    returns: [B, 1] float32 in (0, 1)
    """
    B, D = x.shape
    w1, b1 = params["w1"], params["b1"]
    w2, b2 = params["w2"], params["b2"]
    w3, b3 = params["w3"], params["b3"]
    H1 = w1.shape[0]
    H2 = w2.shape[0]
    assert block_b % 128 == 0, "block_b must be a multiple of 128 lanes"

    bb, b_pad, grid_len = _choose_tiling(B, block_b)

    # Transpose first, then a single lane-axis pad (one fused HBM pass over x).
    xt = x.T                                            # [D, B], batch on lanes
    if b_pad != B:
        xt = jnp.pad(xt, ((0, 0), (0, b_pad - B)))

    md = jnp.dtype(matmul_dtype)
    w3_row = w3.reshape(1, H2)
    if md == jnp.float32:
        xt_in, w1_in, b1_in, w2_in, b2_in, w3_in = xt, w1, b1, w2, b2, w3_row
    else:
        # v6e/v7x: run the elementwise layers in bf16 too (half the vregs/pass);
        # accumulation / logits / sigmoid stay f32 inside the kernel.
        xt_in = xt.astype(md)
        w1_in, b1_in = w1.astype(md), b1.astype(md)
        w2_in, b2_in = w2.astype(md), b2.astype(md)
        w3_in = w3_row.astype(md)

    # Constant index_maps keep the (tiny) weights/biases VMEM-resident across
    # all grid steps; no re-DMA per step.
    resident = lambda shape: pl.BlockSpec(shape, lambda i: (0, 0))

    out_t = pl.pallas_call(
        _discriminator_kernel,
        out_shape=jax.ShapeDtypeStruct((1, b_pad), jnp.float32),
        grid=(grid_len,),
        in_specs=[
            pl.BlockSpec((D, bb), lambda i: (0, i)),    # x^T tile over batch lanes
            resident((H1, D)),                          # w1
            resident((H1, 1)),                          # b1
            resident((H2, H1)),                         # w2
            resident((H2, 1)),                          # b2
            resident((1, H2)),                          # w3 (row for MXU)
            pl.BlockSpec(memory_space=pltpu.MemorySpace.SMEM),  # b3 scalar
        ],
        out_specs=pl.BlockSpec((1, bb), lambda i: (0, i)),      # lane-dense output
        compiler_params=pltpu.CompilerParams(
            dimension_semantics=("parallel",),
            vmem_limit_bytes=48 * 1024 * 1024),
    )(xt_in, w1_in, b1_in, w2_in, b2_in, w3_in, b3)

    return out_t.T[:B]                                  # [B, 1]


def init_params(key, input_dim=2, architecture=(128, 128)):
    """PyTorch nn.Linear-style init (U(-1/sqrt(fan_in), +)), [out, in] layout."""
    dims = [input_dim, *architecture, 1]
    params = {}
    ks = jax.random.split(key, 2 * (len(dims) - 1))
    for li in range(len(dims) - 1):
        fan_in, fan_out = dims[li], dims[li + 1]
        bound = 1.0 / jnp.sqrt(jnp.float32(fan_in))
        w = jax.random.uniform(ks[2 * li], (fan_out, fan_in),
                               minval=-bound, maxval=bound, dtype=jnp.float32)
        b = jax.random.uniform(ks[2 * li + 1], (fan_out, 1),
                               minval=-bound, maxval=bound, dtype=jnp.float32)
        params[f"w{li + 1}"] = w
        params[f"b{li + 1}"] = b
    return params


def _reference_forward(x, params):
    h = x @ params["w1"].T + params["b1"].T
    h = jnp.where(h >= 0, h, NEG_SLOPE * h)
    h = h @ params["w2"].T + params["b2"].T
    h = jnp.where(h >= 0, h, NEG_SLOPE * h)
    h = h @ params["w3"].T + params["b3"].T
    return jax.nn.sigmoid(h)


if __name__ == "__main__":
    key = jax.random.PRNGKey(0)
    k_param, k_x = jax.random.split(key)

    input_dim = 2
    architecture = (128, 128)
    params = init_params(k_param, input_dim=input_dim, architecture=architecture)

    # (batch, matmul_dtype, tolerance): single-tile path, adaptive two-step grid
    # path (B padded only to 128), and the bf16 fast path for v6e/v7x.
    cases = [
        (16, jnp.float32, 1e-4),
        (1100, jnp.float32, 1e-4),
        (256, jnp.bfloat16, 2e-2),
    ]
    for batch, md, tol in cases:
        x = jax.random.normal(jax.random.fold_in(k_x, batch),
                              (batch, input_dim), dtype=jnp.float32)
        out = discriminator_forward(x, params, matmul_dtype=md)
        out = jax.block_until_ready(out)
        ref = _reference_forward(x, params)
        assert out.shape == (batch, 1)
        assert bool(jnp.all(jnp.isfinite(out)))
        assert jnp.allclose(out, ref, atol=tol, rtol=tol), (
            f"mismatch for batch={batch}, dtype={md}")

    print("KERNEL_OK")
</pallas_src>

<mosaic_0001>
module attributes {stable_mosaic.version = 11 : i64} {
  func.func @_discriminator_kernel(%arg0: i32, %arg1: memref<2x128xf32, #tpu.memory_space<vmem>>, %arg2: memref<128x2xf32, #tpu.memory_space<vmem>>, %arg3: memref<128x1xf32, #tpu.memory_space<vmem>>, %arg4: memref<128x128xf32, #tpu.memory_space<vmem>>, %arg5: memref<128x1xf32, #tpu.memory_space<vmem>>, %arg6: memref<1x128xf32, #tpu.memory_space<vmem>>, %arg7: memref<1x1xf32, #tpu.memory_space<smem>>, %arg8: memref<1x128xf32, #tpu.memory_space<vmem>>) attributes {dimension_semantics = [#tpu.dimension_semantics<parallel>], iteration_bounds = array<i64: 1>, scalar_prefetch = 0 : i64, scratch_operands = 0 : i64, tpu.core_type = #tpu.core_type<tc>, window_params = [{transform_indices = @transform_0, window_bounds = array<i64: 2, 128>}, {pipeline_mode = #tpu.pipeline_mode<synchronous>, transform_indices = @transform_1, window_bounds = array<i64: 128, 2>}, {pipeline_mode = #tpu.pipeline_mode<synchronous>, transform_indices = @transform_2, window_bounds = array<i64: 128, 1>}, {pipeline_mode = #tpu.pipeline_mode<synchronous>, transform_indices = @transform_3, window_bounds = array<i64: 128, 128>}, {pipeline_mode = #tpu.pipeline_mode<synchronous>, transform_indices = @transform_4, window_bounds = array<i64: 128, 1>}, {pipeline_mode = #tpu.pipeline_mode<synchronous>, transform_indices = @transform_5, window_bounds = array<i64: 1, 128>}, {transform_indices = @transform_6, window_bounds = array<i64: 1, 1>}, {transform_indices = @transform_7, window_bounds = array<i64: 1, 128>}]} {
    %c0 = arith.constant 0 : index
    %c0_0 = arith.constant 0 : index
    %0 = vector.load %arg1[%c0, %c0_0] : memref<2x128xf32, #tpu.memory_space<vmem>>, vector<2x128xf32>
    %c0_1 = arith.constant 0 : index
    %c0_2 = arith.constant 0 : index
    %1 = vector.load %arg2[%c0_1, %c0_2] : memref<128x2xf32, #tpu.memory_space<vmem>>, vector<128x2xf32>
    %2 = vector.extract_strided_slice %1 {offsets = [0, 0], sizes = [128, 1], strides = [1, 1]} : vector<128x2xf32> to vector<128x1xf32>
    %3 = vector.extract_strided_slice %0 {offsets = [0, 0], sizes = [1, 128], strides = [1, 1]} : vector<2x128xf32> to vector<1x128xf32>
    %4 = vector.broadcast %2 : vector<128x1xf32> to vector<128x128xf32>
    %5 = vector.broadcast %3 : vector<1x128xf32> to vector<128x128xf32>
    %6 = arith.mulf %4, %5 : vector<128x128xf32>
    %7 = vector.extract_strided_slice %1 {offsets = [0, 1], sizes = [128, 1], strides = [1, 1]} : vector<128x2xf32> to vector<128x1xf32>
    %8 = vector.extract_strided_slice %0 {offsets = [1, 0], sizes = [1, 128], strides = [1, 1]} : vector<2x128xf32> to vector<1x128xf32>
    %9 = vector.broadcast %7 : vector<128x1xf32> to vector<128x128xf32>
    %10 = vector.broadcast %8 : vector<1x128xf32> to vector<128x128xf32>
    %11 = arith.mulf %9, %10 : vector<128x128xf32>
    %12 = arith.addf %6, %11 : vector<128x128xf32>
    %c0_3 = arith.constant 0 : index
    %c0_4 = arith.constant 0 : index
    %13 = vector.load %arg3[%c0_3, %c0_4] : memref<128x1xf32, #tpu.memory_space<vmem>>, vector<128x1xf32>
    %14 = vector.broadcast %13 : vector<128x1xf32> to vector<128x128xf32>
    %15 = arith.addf %12, %14 : vector<128x128xf32>
    %cst = arith.constant 2.000000e-01 : f32
    %16 = vector.broadcast %cst : f32 to vector<128x128xf32>
    %17 = arith.mulf %16, %15 : vector<128x128xf32>
    %18 = arith.maximumf %15, %17 : vector<128x128xf32>
    %c0_5 = arith.constant 0 : index
    %c0_6 = arith.constant 0 : index
    %19 = vector.load %arg4[%c0_5, %c0_6] : memref<128x128xf32, #tpu.memory_space<vmem>>, vector<128x128xf32>
    %cst_7 = arith.constant dense<0.000000e+00> : vector<128x128xf32>
    %20 = tpu.matmul %19, %18, %cst_7 {dimension_numbers = #tpu.dot_dimension_numbers<[1], [0], [0], [1], [0, 0, 1, 1], [], []>} : vector<128x128xf32>, vector<128x128xf32>, vector<128x128xf32> -> vector<128x128xf32>
    %c0_8 = arith.constant 0 : index
    %c0_9 = arith.constant 0 : index
    %21 = vector.load %arg5[%c0_8, %c0_9] : memref<128x1xf32, #tpu.memory_space<vmem>>, vector<128x1xf32>
    %22 = vector.broadcast %21 : vector<128x1xf32> to vector<128x128xf32>
    %23 = arith.addf %20, %22 : vector<128x128xf32>
    %cst_10 = arith.constant 2.000000e-01 : f32
    %24 = vector.broadcast %cst_10 : f32 to vector<128x128xf32>
    %25 = arith.mulf %24, %23 : vector<128x128xf32>
    %26 = arith.maximumf %23, %25 : vector<128x128xf32>
    %c0_11 = arith.constant 0 : index
    %c0_12 = arith.constant 0 : index
    %27 = vector.load %arg6[%c0_11, %c0_12] : memref<1x128xf32, #tpu.memory_space<vmem>>, vector<1x128xf32>
    %cst_13 = arith.constant dense<0.000000e+00> : vector<1x128xf32>
    %28 = tpu.matmul %27, %26, %cst_13 {dimension_numbers = #tpu.dot_dimension_numbers<[1], [0], [0], [1], [0, 0, 1, 1], [], []>} : vector<1x128xf32>, vector<128x128xf32>, vector<1x128xf32> -> vector<1x128xf32>
    %c0_14 = arith.constant 0 : index
    %c0_15 = arith.constant 0 : index
    %29 = memref.load %arg7[%c0_14, %c0_15] : memref<1x1xf32, #tpu.memory_space<smem>>
    %30 = vector.broadcast %29 : f32 to vector<1x128xf32>
    %31 = arith.addf %28, %30 : vector<1x128xf32>
    %cst_16 = arith.constant 5.000000e-01 : f32
    %32 = vector.broadcast %cst_16 : f32 to vector<1x128xf32>
    %33 = arith.mulf %32, %31 : vector<1x128xf32>
    %34 = math.tanh %33 : vector<1x128xf32>
    %cst_17 = arith.constant 5.000000e-01 : f32
    %35 = vector.broadcast %cst_17 : f32 to vector<1x128xf32>
    %36 = arith.mulf %35, %34 : vector<1x128xf32>
    %cst_18 = arith.constant 5.000000e-01 : f32
    %37 = vector.broadcast %cst_18 : f32 to vector<1x128xf32>
    %38 = arith.addf %36, %37 : vector<1x128xf32>
    %c0_19 = arith.constant 0 : index
    %c0_20 = arith.constant 0 : index
    %39 = vector.load %arg8[%c0_19, %c0_20] : memref<1x128xf32, #tpu.memory_space<vmem>>, vector<1x128xf32>
    tpu.vector_store %arg8[%c0_19, %c0_20], %38 {strides = array<i32>} : memref<1x128xf32, #tpu.memory_space<vmem>>, vector<1x128xf32>,
    return
  }
  func.func @transform_0(%arg0: i32) -> (i32, i32) {
    %c0_i32 = arith.constant 0 : i32
    %c0_i32_0 = arith.constant 0 : i32
    return %c0_i32, %arg0 : i32, i32
  }
  func.func @transform_1(%arg0: i32) -> (i32, i32) {
    %c0_i32 = arith.constant 0 : i32
    %c0_i32_0 = arith.constant 0 : i32
    %c0_i32_1 = arith.constant 0 : i32
    return %c0_i32, %c0_i32_0 : i32, i32
  }
  func.func @transform_2(%arg0: i32) -> (i32, i32) {
    %c0_i32 = arith.constant 0 : i32
    %c0_i32_0 = arith.constant 0 : i32
    %c0_i32_1 = arith.constant 0 : i32
    return %c0_i32, %c0_i32_0 : i32, i32
  }
  func.func @transform_3(%arg0: i32) -> (i32, i32) {
    %c0_i32 = arith.constant 0 : i32
    %c0_i32_0 = arith.constant 0 : i32
    %c0_i32_1 = arith.constant 0 : i32
    return %c0_i32, %c0_i32_0 : i32, i32
  }
  func.func @transform_4(%arg0: i32) -> (i32, i32) {
    %c0_i32 = arith.constant 0 : i32
    %c0_i32_0 = arith.constant 0 : i32
    %c0_i32_1 = arith.constant 0 : i32
    return %c0_i32, %c0_i32_0 : i32, i32
  }
  func.func @transform_5(%arg0: i32) -> (i32, i32) {
    %c0_i32 = arith.constant 0 : i32
    %c0_i32_0 = arith.constant 0 : i32
    %c0_i32_1 = arith.constant 0 : i32
    return %c0_i32, %c0_i32_0 : i32, i32
  }
  func.func @transform_6(%arg0: i32) -> (i32, i32) {
    %c0_i32 = arith.constant 0 : i32
    %c0_i32_0 = arith.constant 0 : i32
    %c0_i32_1 = arith.constant 0 : i32
    return %c0_i32, %c0_i32_0 : i32, i32
  }
  func.func @transform_7(%arg0: i32) -> (i32, i32) {
    %c0_i32 = arith.constant 0 : i32
    %c0_i32_0 = arith.constant 0 : i32
    return %c0_i32, %arg0 : i32, i32
  }
}

</mosaic_0001>

<bundles_post_ra>
// kernel: tpu_custom_call.1
= control target key start
LH: loop header
LB: loop body
LE: loop exit
PB: predicated region body
PF: predicated region fallthrough
CT: control target
= control target key end

     0   :  { %v958_v2 = vmov 1   ;;  %v959_v3 = vmov 0   ;;  %s1317_s0 = inlined_call_operand.vmem [shape: f32[2,128], index: 0, kind: input, shape index: {}]   ;;  %s1318_s1 = inlined_call_operand.vmem [shape: f32[128,2], index: 1, kind: input, shape index: {}]   ;;  %s1319_s2 = inlined_call_operand.vmem [shape: f32[128,1], index: 2, kind: input, shape index: {}]   ;;  %s1320_s3 = inlined_call_operand.vmem [shape: f32[128,128], index: 3, kind: input, shape index: {}]   ;;  %s1321_s4 = inlined_call_operand.vmem [shape: f32[128,1], index: 4, kind: input, shape index: {}]   ;;  %s1322_s5 = inlined_call_operand.vmem [shape: f32[1,128], index: 5, kind: input, shape index: {}]   ;;  %s1323_s6 = inlined_call_operand.<no memory space> [shape: f32[1,1], index: 6, kind: input, shape index: {}]   ;;  %s1324_s7 = inlined_call_operand.hbm [shape: f32[1,128], index: 7, kind: output, shape index: {}]  }
   0x1   :  { %v44_v0 = vld [vmem:[%s1318_s1 + $0x78] sm:$0xff]  ;;  %v43_v1 = vld [vmem:[%s1318_s1 + $0x70] sm:$0xff]  ;;  %915 = vset.pattern.permute.xlu0 %v958_v2  ;;  %916 = vset.pattern.permute.xlu1 %v959_v3  ;;  %v42_v4 = vld [vmem:[%s1318_s1 + $0x68] sm:$0xff] }
   0x2   :  { %206 = vperm.xlu0 %915, %v44_v0   ;;  %117 = vperm.xlu1 %916, %v43_v1   ;;  %v39_v5 = vld [vmem:[%s1318_s1 + $0x50] sm:$0xff]  ;;  %v38_v6 = vld [vmem:[%s1318_s1 + $0x48] sm:$0xff]  ;;  %v260_v7 = vld [vmem:[%s1319_s2 + $0x78] sm:$0xff] }
   0x3   :  { %v35_v8 = vld [vmem:[%s1318_s1 + $0x30] sm:$0xff] }
   0x6   :  { %917 = vset.pattern.permute.xlu1 %v958_v2  ;;  %198 = vperm.xlu0 %915, %v42_v4  }
   0x7   :  { %202 = vperm.xlu1 %917, %v43_v1  }
   0xa   :  { %186 = vperm.xlu0 %915, %v39_v5  }
   0xb   :  { %918 = vset.pattern.permute.xlu1 %v959_v3 }
   0xc   :  { %112 = vperm.xlu1 %918, %v42_v4  }
   0xe   :  { %182 = vperm.xlu0 %915, %v38_v6  }
   0xf   :  { %13 = vsyncpa [#allocation4], 0  ;;  %v41_v9 = vld [vmem:[%s1318_s1 + $0x60] sm:$0xff]  ;;  %v34_v10 = vld [vmem:[%s1318_s1 + $0x28] sm:$0xff]  ;;  %v125_v55 = vlaneseq  ;;  %vm961_vm0 = vmmov 0   ;;  %s962_s10 = smov [#allocation3]  }
  0x10   :  { %338 = vperm.xlu1 %918, %v260_v7   ;;  %v259_v11 = vld [vmem:[%s1319_s2 + $0x70] sm:$0xff]  ;;  %v1048_v13 = vld [vmem:[%s1318_s1 + $0x8] sm:$0xff]  ;;  %v40_v14 = vld [vmem:[%s1318_s1 + $0x58] sm:$0xff] }
  0x11   :  { %v1041_v12 = vld [vmem:[%s1318_s1 + $0x10] sm:$0xff]  ;;  %v257_v15 = vld [vmem:[%s1319_s2 + $0x60] sm:$0xff]  ;;  %v258_v16 = vld [vmem:[%s1319_s2 + $0x68] sm:$0xff]  ;;  %v126_v59 = vshrl.u32 %v125_v55, 7 }
  0x12   :  { %170 = vperm.xlu0 %915, %v35_v8   ;;  %v256_v17 = vld [vmem:[%s1319_s2 + $0x58] sm:$0xff]  ;;  %v37_v18 = vld [vmem:[%s1318_s1 + $0x40] sm:$0xff]  ;;  %v255_v20 = vld [vmem:[%s1319_s2 + $0x50] sm:$0xff] }
  0x13   :  { %v36_v19 = vld [vmem:[%s1318_s1 + $0x38] sm:$0xff]  ;;  %v254_v21 = vld [vmem:[%s1319_s2 + $0x48] sm:$0xff]  ;;  %v33_v22 = vld [vmem:[%s1318_s1 + $0x20] sm:$0xff]  ;;  %v211_v61 = vsub.s32 1, %v126_v59  ;;  %v127_v63 = vsub.s32 0, %v126_v59 }
  0x14   :  { %919 = vset.pattern.permute.xlu1 %v958_v2  ;;  %v32_v23 = vld [vmem:[%s1318_s1 + $0x18] sm:$0xff]  ;;  %v250_v24 = vld [vmem:[%s1319_s2 + $0x28] sm:$0xff]  ;;  %v253_v25 = vld [vmem:[%s1319_s2 + $0x40] sm:$0xff] }
  0x15   :  { %194 = vperm.xlu1 %919, %v41_v9   ;;  %v29_v26 = vld [vmem:[%s1318_s1] sm:$0xff]  ;;  %v246_v27 = vld [vmem:[%s1319_s2 + $0x8] sm:$0xff]  ;;  %v252_v28 = vld [vmem:[%s1319_s2 + $0x38] sm:$0xff]  ;;  %s762_s1 = sshll.u32 %s962_s10, 4  ;;  %s763_s1 = int_to_ptr.vmem [resolvable:$true] %s762_s1 }
  0x16   :  { %166 = vperm.xlu0 %915, %v34_v10   ;;  %v420_v29 = vld [vmem:[%s1321_s4 + $0x78] sm:$0xff]  ;;  %v418_v30 = vld [vmem:[%s1321_s4 + $0x68] sm:$0xff]  ;;  %v251_v31 = vld [vmem:[%s1319_s2 + $0x30] sm:$0xff]  ;;  %s940_s11 = scalar_lea.vmem %s763_s1, 32  ;;  %p941_p1 = scmp.lt.s32.totalorder %s763_s1, %s763_s1 }
  0x17   :  { %v416_v32 = vld [vmem:[%s1321_s4 + $0x58] sm:$0xff]  ;;  %v414_v33 = vld [vmem:[%s1321_s4 + $0x48] sm:$0xff]  ;;  %v249_v36 = vld [vmem:[%s1319_s2 + $0x20] sm:$0xff] }
  0x18   :  { %v412_v34 = vld [vmem:[%s1321_s4 + $0x38] sm:$0xff]  ;;  %v410_v35 = vld [vmem:[%s1321_s4 + $0x28] sm:$0xff]  ;;  %v247_v40 = vld [vmem:[%s1319_s2 + $0x10] sm:$0xff] }
  0x19   :  { %920 = vset.pattern.permute.xlu1 %v959_v3  ;;  %v408_v37 = vld [vmem:[%s1321_s4 + $0x18] sm:$0xff]  ;;  %v406_v38 = vld [vmem:[%s1321_s4 + $0x8] sm:$0xff]  ;;  %v245_v41 = vld [vmem:[%s1319_s2] sm:$0xff] }
  0x1a   :  { %333 = vperm.xlu1 %920, %v259_v11   ;;  %154 = vperm.xlu0 %915, %v1041_v12   ;;  %v248_v39 = vld [vmem:[%s1319_s2 + $0x18] sm:$0xff]  ;;  %v419_v44 = vld [vmem:[%s1321_s4 + $0x70] sm:$0xff]  ;;  %v389_v45 = vld [vmem:[%s1320_s3] sm:$0xff] }
  0x1b   :  { %851 = vmatprep.mubr.f32.mxu0 %v389_v45  ;;  %v417_v48 = vld [vmem:[%s1321_s4 + $0x60] sm:$0xff]  ;;  %v415_v51 = vld [vmem:[%s1321_s4 + $0x50] sm:$0xff] }
  0x1c   :  { %v413_v54 = vld [vmem:[%s1321_s4 + $0x40] sm:$0xff]  ;;  %v411_v57 = vld [vmem:[%s1321_s4 + $0x30] sm:$0xff] }
  0x1d   :  { %v409_v62 = vld [vmem:[%s1321_s4 + $0x20] sm:$0xff]  ;;  %v407_v4 = vld [vmem:[%s1321_s4 + $0x10] sm:$0xff] }
  0x1e   :  { %921 = vset.pattern.permute.xlu1 %v958_v2  ;;  %150 = vperm.xlu0 %915, %v1048_v13  }
  0x1f   :  { %190 = vperm.xlu1 %921, %v40_v14  }
  0x22   :  { %931 = vset.pattern.permute.xlu0 %v959_v3 }
  0x23   :  { %922 = vset.pattern.permute.xlu1 %v959_v3  ;;  %122 = vperm.xlu0 %931, %v44_v0  }
  0x24   :  { %97 = vperm.xlu1 %922, %v39_v5  }
  0x27   :  { %107 = vperm.xlu0 %931, %v41_v9   ;;  %v405_v9 = vld [vmem:[%s1321_s4] sm:$0xff] }
  0x28   :  { %323 = vperm.xlu1 %922, %v257_v15  }
  0x2b   :  { %102 = vperm.xlu0 %931, %v40_v14  }
  0x2c   :  { %92 = vperm.xlu1 %922, %v38_v6  }
  0x2f   :  { %328 = vperm.xlu0 %931, %v258_v16  }
  0x30   :  { %318 = vperm.xlu1 %922, %v256_v17  }
  0x33   :  { %87 = vperm.xlu0 %931, %v37_v18  }
  0x34   :  { %923 = vset.pattern.permute.xlu1 %v958_v2 }
  0x35   :  { %178 = vperm.xlu1 %923, %v37_v18  }
  0x37   :  { %82 = vperm.xlu0 %931, %v36_v19  }
  0x39   :  { %924 = vset.pattern.permute.xlu1 %v959_v3 }
  0x3a   :  { %313 = vperm.xlu1 %924, %v255_v20  }
  0x3b   :  { %308 = vperm.xlu0 %931, %v254_v21  }
  0x3e   :  { %925 = vset.pattern.permute.xlu1 %v958_v2 }
  0x3f   :  { %174 = vperm.xlu1 %925, %v36_v19   ;;  %67 = vperm.xlu0 %931, %v33_v22  }
  0x43   :  { %926 = vset.pattern.permute.xlu1 %v959_v3  ;;  %62 = vperm.xlu0 %931, %v32_v23  }
  0x44   :  { %77 = vperm.xlu1 %926, %v35_v8  }
  0x47   :  { %288 = vperm.xlu0 %931, %v250_v24  }
  0x48   :  { %303 = vperm.xlu1 %926, %v253_v25  }
  0x4b   :  { %47 = vperm.xlu0 %931, %v29_v26  }
  0x4c   :  { %72 = vperm.xlu1 %926, %v34_v10  }
  0x4f   :  { %268 = vperm.xlu0 %931, %v246_v27  }
  0x50   :  { %298 = vperm.xlu1 %926, %v252_v28  }
  0x53   :  { %498 = vperm.xlu0 %931, %v420_v29  }
  0x54   :  { %927 = vset.pattern.permute.xlu1 %v958_v2 }
  0x55   :  { %162 = vperm.xlu1 %927, %v33_v22  }
  0x57   :  { %488 = vperm.xlu0 %931, %v418_v30  }
  0x59   :  { %928 = vset.pattern.permute.xlu1 %v959_v3 }
  0x5a   :  { %293 = vperm.xlu1 %928, %v251_v31  }
  0x5b   :  { %478 = vperm.xlu0 %931, %v416_v32  }
  0x5e   :  { %929 = vset.pattern.permute.xlu1 %v958_v2 }
  0x5f   :  { %158 = vperm.xlu1 %929, %v32_v23   ;;  %468 = vperm.xlu0 %931, %v414_v33  }
  0x63   :  { %930 = vset.pattern.permute.xlu1 %v959_v3  ;;  %458 = vperm.xlu0 %931, %v412_v34  }
  0x64   :  { %57 = vperm.xlu1 %930, %v1041_v12  }
  0x67   :  { %448 = vperm.xlu0 %931, %v410_v35  }
  0x68   :  { %283 = vperm.xlu1 %930, %v249_v36  }
  0x6b   :  { %438 = vperm.xlu0 %931, %v408_v37  }
  0x6c   :  { %52 = vperm.xlu1 %930, %v1048_v13  }
  0x6f   :  { %428 = vperm.xlu0 %931, %v406_v38  }
  0x70   :  { %278 = vperm.xlu1 %930, %v248_v39  }
  0x74   :  { %932 = vset.pattern.permute.xlu1 %v958_v2  ;;  %v28_v2 = vld [vmem:[%s1317_s0] sm:$0x3] }
  0x75   :  { %146 = vperm.xlu1 %932, %v29_v26   ;;  %v1189_v5 = vrot.slane %v28_v2, %v127_v63 }
  0x79   :  { %933 = vset.pattern.permute.xlu1 %v959_v3  ;;  %v1184_v3 = vrot.slane %v28_v2, %v211_v61 }
  0x7a   :  { %273 = vperm.xlu1 %933, %v247_v40  }
  0x7d   :  { %v118_v42 = vpop.permute.xlu1 %117  ;;  %v207_v43 = vpop.permute.xlu0 %206 }
  0x7e   :  { %263 = vperm.xlu1 %933, %v245_v41   ;;  %v143_v10 = vmul.f32 %v1189_v5, %v118_v42  ;;  %v228_v11 = vmul.f32 %v1184_v3, %v207_v43 }
  0x81   :  { %v199_v46 = vpop.permute.xlu0 %198 }
  0x82   :  { %v203_v47 = vpop.permute.xlu1 %202  ;;  %493 = vperm.xlu1 %933, %v419_v44   ;;  %v226_v23 = vmul.f32 %v1184_v3, %v199_v46 }
  0x83   :  { %v227_v8 = vmul.f32 %v1184_v3, %v203_v47 }
  0x85   :  { %v1159_v49 = vpop.permute.xlu0 %186  ;;  %v243_v13 = vadd.f32 %v227_v8, %v143_v10 }
  0x86   :  { %483 = vperm.xlu1 %933, %v417_v48   ;;  %v223_v46 = vmul.f32 %v1184_v3, %v1159_v49 }
  0x87   :  { %v113_v50 = vpop.permute.xlu1 %112 }
  0x88   :  { %v142_v24 = vmul.f32 %v1189_v5, %v113_v50 }
  0x89   :  { %v1164_v52 = vpop.permute.xlu0 %182 }
  0x8a   :  { %473 = vperm.xlu1 %933, %v415_v51   ;;  %v242_v35 = vadd.f32 %v226_v23, %v142_v24  ;;  %v222_v50 = vmul.f32 %v1184_v3, %v1164_v52 }
  0x8b   :  { %v339_v53 = vpop.permute.xlu1 %338 }
  0x8d   :  { %v1169_v56 = vpop.permute.xlu0 %170 }
  0x8e   :  { %463 = vperm.xlu1 %933, %v413_v54  }
  0x90   :  { %v195_v58 = vpop.permute.xlu1 %194 }
  0x91   :  { %v1174_v60 = vpop.permute.xlu0 %166  ;;  %v225_v19 = vmul.f32 %v1184_v3, %v195_v58 }
  0x92   :  { %453 = vperm.xlu1 %933, %v411_v57   ;;  %v218_v24 = vmul.f32 %v1184_v3, %v1174_v60 }
  0x95   :  { %v334_v0 = vpop.permute.xlu1 %333  ;;  %v1179_v1 = vpop.permute.xlu0 %154 }
  0x96   :  { %443 = vperm.xlu1 %933, %v409_v62   ;;  %v355_v16 = vadd.f32 %v334_v0, %v243_v13 }
  0x98   :  { %v371_v25 = vmul.f32 0.2, %v355_v16 }
  0x99   :  { %v1191_v6 = vpop.permute.xlu0 %150 }
  0x9a   :  { %v191_v7 = vpop.permute.xlu1 %190  ;;  %433 = vperm.xlu1 %933, %v407_v4   ;;  %v387_v33 = vmax.f32 %v355_v16, %v371_v25 }
  0x9b   :  { %v224_v29 = vmul.f32 %v1184_v3, %v191_v7 }
  0x9e   :  { %v123_v12 = vpop.permute.xlu0 %122  ;;  %423 = vperm.xlu1 %933, %v405_v9  }
  0x9f   :  { %v144_v14 = vmul.f32 %v1189_v5, %v123_v12  ;;  %v98_v15 = vpop.permute.xlu1 %97 }
  0xa0   :  { %v139_v47 = vmul.f32 %v1189_v5, %v98_v15 }
  0xa1   :  { %v244_v17 = vadd.f32 %v228_v11, %v144_v14 }
  0xa2   :  { %v108_v18 = vpop.permute.xlu0 %107  ;;  %v239_v57 = vadd.f32 %v223_v46, %v139_v47 }
  0xa3   :  { %v141_v20 = vmul.f32 %v1189_v5, %v108_v18  ;;  %v324_v21 = vpop.permute.xlu1 %323  ;;  %v356_v22 = vadd.f32 %v339_v53, %v244_v17 }
  0xa5   :  { %v241_v26 = vadd.f32 %v225_v19, %v141_v20  ;;  %v372_v27 = vmul.f32 0.2, %v356_v22 }
  0xa6   :  { %v103_v28 = vpop.permute.xlu0 %102 }
  0xa7   :  { %v140_v30 = vmul.f32 %v1189_v5, %v103_v28  ;;  %v93_v31 = vpop.permute.xlu1 %92  ;;  %v388_v32 = vmax.f32 %v356_v22, %v372_v27  ;;  %v353_v34 = vadd.f32 %v324_v21, %v241_v26 }
  0xa8   :  { %v138_v53 = vmul.f32 %v1189_v5, %v93_v31 }
  0xa9   :  { %819 = vmatprep.subr.mxu0 %v388_v32  ;;  %v240_v36 = vadd.f32 %v224_v29, %v140_v30  ;;  %v369_v41 = vmul.f32 0.2, %v353_v34  ;;  %v219_v30 = vmul.f32 %v1184_v3, %v1169_v56 }
  0xaa   :  { %v329_v37 = vpop.permute.xlu0 %328  ;;  %820 = vmatpush3.msra.mxu0 %v388_v32  ;;  %v238_v59 = vadd.f32 %v222_v50, %v138_v53 }
  0xab   :  { %v354_v38 = vadd.f32 %v329_v37, %v242_v35  ;;  %v319_v39 = vpop.permute.xlu1 %318  ;;  %821 = vmatprep.subr.mxu0 %v387_v33  ;;  %v385_v51 = vmax.f32 %v353_v34, %v369_v41 }
  0xac   :  { %v352_v40 = vadd.f32 %v319_v39, %v240_v36  ;;  %822 = vmatpush3.msra.mxu0 %v387_v33 }
  0xad   :  { %v370_v42 = vmul.f32 0.2, %v354_v38 }
  0xae   :  { %v88_v43 = vpop.permute.xlu0 %87  ;;  %v368_v45 = vmul.f32 0.2, %v352_v40 }
  0xaf   :  { %v386_v44 = vmax.f32 %v354_v38, %v370_v42  ;;  %v137_v7 = vmul.f32 %v1189_v5, %v88_v43 }
  0xb0   :  { %v179_v48 = vpop.permute.xlu1 %178  ;;  %v384_v55 = vmax.f32 %v352_v40, %v368_v45 }
  0xb1   :  { %823 = vmatprep.subr.mxu0 %v386_v44  ;;  %v221_v8 = vmul.f32 %v1184_v3, %v179_v48 }
  0xb2   :  { %v83_v54 = vpop.permute.xlu0 %82  ;;  %824 = vmatpush3.msra.mxu0 %v386_v44 }
  0xb3   :  { %825 = vmatprep.subr.mxu0 %v385_v51  ;;  %v237_v10 = vadd.f32 %v221_v8, %v137_v7  ;;  %v136_v13 = vmul.f32 %v1189_v5, %v83_v54 }
  0xb4   :  { %826 = vmatpush3.msra.mxu0 %v385_v51 }
  0xb5   :  { %v314_v58 = vpop.permute.xlu1 %313  ;;  %827 = vmatprep.subr.mxu0 %v384_v55 }
  0xb6   :  { %v351_v49 = vadd.f32 %v314_v58, %v239_v57  ;;  %v309_v61 = vpop.permute.xlu0 %308  ;;  %828 = vmatpush3.msra.mxu0 %v384_v55  ;;  %v214_v58 = vmul.f32 %v1184_v3, %v1191_v6 }
  0xb7   :  { %v350_v62 = vadd.f32 %v309_v61, %v238_v59 }
  0xb8   :  { %v367_v63 = vmul.f32 0.2, %v351_v49 }
  0xb9   :  { %v366_v0 = vmul.f32 0.2, %v350_v62 }
  0xba   :  { %v383_v52 = vmax.f32 %v351_v49, %v367_v63  ;;  %v175_v2 = vpop.permute.xlu1 %174  ;;  %v68_v16 = vpop.permute.xlu0 %67 }
  0xbb   :  { %v382_v4 = vmax.f32 %v350_v62, %v366_v0  ;;  %v220_v14 = vmul.f32 %v1184_v3, %v175_v2  ;;  %v133_v56 = vmul.f32 %v1189_v5, %v68_v16  ;;  %v215_v0 = vmul.f32 %v1184_v3, %v1179_v1 }
  0xbc   :  { %829 = vmatprep.subr.mxu0 %v383_v52 }
  0xbd   :  { %830 = vmatpush3.msra.mxu0 %v383_v52  ;;  %v236_v19 = vadd.f32 %v220_v14, %v136_v13 }
  0xbe   :  { %831 = vmatprep.subr.mxu0 %v382_v4  ;;  %v63_v23 = vpop.permute.xlu0 %62 }
  0xbf   :  { %v78_v9 = vpop.permute.xlu1 %77  ;;  %832 = vmatpush3.msra.mxu0 %v382_v4  ;;  %v132_v48 = vmul.f32 %v1189_v5, %v63_v23  ;;  %v397_v23 = vld [vmem:[%s1320_s3 + $0x40] sm:$0xff] }
  0xc0   :  { %v135_v26 = vmul.f32 %v1189_v5, %v78_v9 }
  0xc2   :  { %v289_v31 = vpop.permute.xlu0 %288  ;;  %v235_v33 = vadd.f32 %v219_v30, %v135_v26  ;;  %v400_v26 = vld [vmem:[%s1320_s3 + $0x58] sm:$0xff] }
  0xc3   :  { %v304_v11 = vpop.permute.xlu1 %303  ;;  %v404_v30 = vld [vmem:[%s1320_s3 + $0x78] sm:$0xff] }
  0xc4   :  { %v349_v12 = vadd.f32 %v304_v11, %v237_v10 }
  0xc6   :  { %v365_v15 = vmul.f32 0.2, %v349_v12  ;;  %v48_v57 = vpop.permute.xlu0 %47 }
  0xc7   :  { %v73_v17 = vpop.permute.xlu1 %72  ;;  %v129_v9 = vmul.f32 %v1189_v5, %v48_v57 }
  0xc8   :  { %v381_v18 = vmax.f32 %v349_v12, %v365_v15  ;;  %v134_v21 = vmul.f32 %v1189_v5, %v73_v17 }
  0xca   :  { %833 = vmatprep.subr.mxu0 %v381_v18  ;;  %v234_v27 = vadd.f32 %v218_v24, %v134_v21  ;;  %v269_v52 = vpop.permute.xlu0 %268  ;;  %v395_v21 = vld [vmem:[%s1320_s3 + $0x30] sm:$0xff]  ;;  %v398_v24 = vld [vmem:[%s1320_s3 + $0x48] sm:$0xff] }
  0xcb   :  { %v299_v20 = vpop.permute.xlu1 %298  ;;  %834 = vmatpush3.msra.mxu0 %v381_v18  ;;  %v392_v18 = vld [vmem:[%s1320_s3 + $0x18] sm:$0xff] }
  0xcc   :  { %v348_v22 = vadd.f32 %v299_v20, %v236_v19  ;;  %v346_v32 = vadd.f32 %v289_v31, %v234_v27  ;;  %v393_v19 = vld [vmem:[%s1320_s3 + $0x20] sm:$0xff]  ;;  %v394_v20 = vld [vmem:[%s1320_s3 + $0x28] sm:$0xff]  ;;  %v960_v31 = vmov 0.0  }
  0xcd   :  { %v401_v27 = vld [vmem:[%s1320_s3 + $0x60] sm:$0xff]  ;;  %875 = vmatprep.subr.mxu1 %v960_v31  ;;  %907 = vmatprep.mubr.msk.f32.mxu1 %vm961_vm0, %v960_v31 }
  0xce   :  { %v364_v25 = vmul.f32 0.2, %v348_v22  ;;  %v362_v37 = vmul.f32 0.2, %v346_v32 }
  0xd0   :  { %v380_v28 = vmax.f32 %v348_v22, %v364_v25  ;;  %v163_v29 = vpop.permute.xlu1 %162  ;;  %v378_v39 = vmax.f32 %v346_v32, %v362_v37  ;;  %v396_v22 = vld [vmem:[%s1320_s3 + $0x38] sm:$0xff]  ;;  %v399_v25 = vld [vmem:[%s1320_s3 + $0x50] sm:$0xff]  ;;  %v499_v37 = vpop.permute.xlu0 %498 }
  0xd1   :  { %v217_v40 = vmul.f32 %v1184_v3, %v163_v29  ;;  %v403_v29 = vld [vmem:[%s1320_s3 + $0x70] sm:$0xff] }
  0xd2   :  { %835 = vmatprep.subr.mxu0 %v380_v28 }
  0xd3   :  { %836 = vmatpush3.msra.mxu0 %v380_v28  ;;  %v233_v42 = vadd.f32 %v217_v40, %v133_v56  ;;  %v402_v28 = vld [vmem:[%s1320_s3 + $0x68] sm:$0xff] }
  0xd5   :  { %v294_v34 = vpop.permute.xlu1 %293 }
  0xd6   :  { %v347_v35 = vadd.f32 %v294_v34, %v235_v33 }
  0xd8   :  { %v363_v36 = vmul.f32 0.2, %v347_v35 }
  0xda   :  { %v379_v38 = vmax.f32 %v347_v35, %v363_v36  ;;  %v159_v60 = vpop.permute.xlu1 %158 }
  0xdb   :  { %v216_v45 = vmul.f32 %v1184_v3, %v159_v60 }
  0xdc   :  { %837 = vmatprep.subr.mxu0 %v379_v38 }
  0xdd   :  { %838 = vmatpush3.msra.mxu0 %v379_v38  ;;  %v232_v51 = vadd.f32 %v216_v45, %v132_v48 }
  0xde   :  { %839 = vmatprep.subr.mxu0 %v378_v39 }
  0xdf   :  { %v58_v41 = vpop.permute.xlu1 %57  ;;  %840 = vmatpush3.msra.mxu0 %v378_v39 }
  0xe0   :  { %v131_v49 = vmul.f32 %v1189_v5, %v58_v41  ;;  %v489_v41 = vpop.permute.xlu0 %488 }
  0xe2   :  { %v231_v7 = vadd.f32 %v215_v0, %v131_v49 }
  0xe3   :  { %v284_v43 = vpop.permute.xlu1 %283 }
  0xe4   :  { %v345_v44 = vadd.f32 %v284_v43, %v233_v42  ;;  %v479_v45 = vpop.permute.xlu0 %478 }
  0xe6   :  { %v361_v46 = vmul.f32 0.2, %v345_v44 }
  0xe7   :  { %v53_v47 = vpop.permute.xlu1 %52 }
  0xe8   :  { %v377_v50 = vmax.f32 %v345_v44, %v361_v46  ;;  %v130_v54 = vmul.f32 %v1189_v5, %v53_v47  ;;  %v391_v5 = vld [vmem:[%s1320_s3 + $0x10] sm:$0xff] }
  0xea   :  { %841 = vmatprep.subr.mxu0 %v377_v50  ;;  %v230_v61 = vadd.f32 %v214_v58, %v130_v54 }
  0xeb   :  { %v279_v53 = vpop.permute.xlu1 %278  ;;  %842 = vmatpush3.msra.mxu0 %v377_v50 }
  0xec   :  { %v344_v55 = vadd.f32 %v279_v53, %v232_v51  ;;  %v342_v2 = vadd.f32 %v269_v52, %v230_v61  ;;  %v469_v51 = vpop.permute.xlu0 %468 }
  0xee   :  { %v360_v59 = vmul.f32 0.2, %v344_v55  ;;  %v358_v12 = vmul.f32 0.2, %v342_v2 }
  0xf0   :  { %v376_v62 = vmax.f32 %v344_v55, %v360_v59  ;;  %v147_v63 = vpop.permute.xlu1 %146  ;;  %v374_v1 = vmax.f32 %v342_v2, %v358_v12  ;;  %v459_v2 = vpop.permute.xlu0 %458 }
  0xf1   :  { %v213_v4 = vmul.f32 %v1184_v3, %v147_v63  ;;  %v390_v3 = vld [vmem:[%s1320_s3 + $0x8] sm:$0xff] }
  0xf2   :  { %843 = vmatprep.subr.mxu0 %v376_v62 }
  0xf3   :  { %844 = vmatpush3.msra.mxu0 %v376_v62  ;;  %v229_v11 = vadd.f32 %v213_v4, %v129_v9 }
  0xf5   :  { %v274_v8 = vpop.permute.xlu1 %273 }
  0xf6   :  { %v343_v6 = vadd.f32 %v274_v8, %v231_v7 }
  0xf8   :  { %v359_v10 = vmul.f32 0.2, %v343_v6 }
  0xf9   :  { %v264_v13 = vpop.permute.xlu1 %263 }
  0xfa   :  { %v375_v14 = vmax.f32 %v343_v6, %v359_v10  ;;  %v341_v15 = vadd.f32 %v264_v13, %v229_v11 }
  0xfc   :  { %v357_v16 = vmul.f32 0.2, %v341_v15  ;;  %845 = vmatprep.subr.mxu0 %v375_v14 }
  0xfd   :  { %846 = vmatpush3.msra.mxu0 %v375_v14  ;;  %v494_v60 = vpop.permute.xlu1 %493 }
  0xfe   :  { %v373_v17 = vmax.f32 %v341_v15, %v357_v16  ;;  %847 = vmatprep.subr.mxu0 %v374_v1  ;;  %v449_v15 = vpop.permute.xlu0 %448 }
  0xff   :  { %848 = vmatpush3.msra.mxu0 %v374_v1 }
 0x100   :  { %849 = vmatprep.subr.mxu0 %v373_v17 }
 0x101   :  { %850 = vmatpush3.msra.mxu0 %v373_v17  ;;  %v484_v42 = vpop.permute.xlu1 %483 }
 0x102   :  { %852 = vmatmul.mubr.f32.vlgmr.msra.gmra.mxu0 %v390_v3 }
 0x103   :  { %854 = vmatprep.mubr.f32.mxu0 %v391_v5 }
 0x105   :  { %v474_v47 = vpop.permute.xlu1 %473 }
 0x106   :  { %855 = vmatmul.mubr.f32.gmra.mxu0 %v392_v18 }
 0x107   :  { %857 = vmatprep.mubr.f32.mxu0 %v393_v19 }
 0x109   :  { %v464_v57 = vpop.permute.xlu1 %463 }
 0x10a   :  { %858 = vmatmul.mubr.f32.gmra.mxu0 %v394_v20 }
 0x10b   :  { %860 = vmatprep.mubr.f32.mxu0 %v395_v21 }
 0x10d   :  { %v454_v9 = vpop.permute.xlu1 %453 }
 0x10e   :  { %861 = vmatmul.mubr.f32.gmra.mxu0 %v396_v22 }
 0x10f   :  { %863 = vmatprep.mubr.f32.mxu0 %v397_v23  ;;  %v439_v23 = vpop.permute.xlu0 %438 }
 0x111   :  { %v444_v3 = vpop.permute.xlu1 %443 }
 0x112   :  { %864 = vmatmul.mubr.f32.gmra.mxu0 %v398_v24 }
 0x113   :  { %866 = vmatprep.mubr.f32.mxu0 %v399_v25 }
 0x116   :  { %867 = vmatmul.mubr.f32.gmra.mxu0 %v400_v26 }
 0x117   :  { %869 = vmatprep.mubr.f32.mxu0 %v401_v27  ;;  %v434_v27 = vpop.permute.xlu1 %433 }
 0x11a   :  { %870 = vmatmul.mubr.f32.gmra.mxu0 %v402_v28 }
 0x11b   :  { %872 = vmatprep.mubr.f32.mxu0 %v403_v29 }
 0x11e   :  { %873 = vmatmul.mubr.f32.gmra.mxu0 %v404_v30 }
 0x1c2   :  { %v1281_v32 = vpop.f32.mrf.mxu0 }
 0x1c4   :  { %v1283_v33 = vpop.f32.mrf.mxu0 }
 0x1c6   :  { %v1285_v34 = vpop.f32.mrf.mxu0 }
 0x1c7   :  { %v583_v28 = vadd.f32 %v1285_v34, %v439_v23 }
 0x1c8   :  { %v1287_v35 = vpop.f32.mrf.mxu0 }
 0x1ca   :  { %v859_v36 = vpop.f32.mrf.mxu0 }
 0x1cb   :  { %v593_v20 = vadd.f32 %v859_v36, %v449_v15  ;;  %v578_v36 = vadd.f32 %v1287_v35, %v434_v27 }
 0x1cc   :  { %v587_v38 = vpop.f32.mrf.mxu0 }
 0x1cd   :  { %v588_v24 = vadd.f32 %v587_v38, %v444_v3  ;;  %v651_v29 = vmul.f32 0.2, %v593_v20 }
 0x1ce   :  { %v862_v39 = vpop.f32.mrf.mxu0 }
 0x1cf   :  { %v603_v16 = vadd.f32 %v862_v39, %v459_v2  ;;  %v429_v39 = vpop.permute.xlu0 %428 }
 0x1d0   :  { %v597_v40 = vpop.f32.mrf.mxu0  ;;  %v573_v38 = vadd.f32 %v1281_v32, %v429_v39 }
 0x1d1   :  { %v598_v5 = vadd.f32 %v597_v40, %v454_v9  ;;  %v653_v21 = vmul.f32 0.2, %v603_v16  ;;  %v649_v40 = vmul.f32 0.2, %v583_v28 }
 0x1d2   :  { %v865_v56 = vpop.f32.mrf.mxu0  ;;  %v647_v35 = vmul.f32 0.2, %v573_v38 }
 0x1d3   :  { %v613_v6 = vadd.f32 %v865_v56, %v469_v51  ;;  %v652_v25 = vmul.f32 0.2, %v598_v5  ;;  %v669_v30 = vmax.f32 %v603_v16, %v653_v21  ;;  %v424_v56 = vpop.permute.xlu1 %423 }
 0x1d4   :  { %v607_v43 = vpop.f32.mrf.mxu0  ;;  %v568_v34 = vadd.f32 %v1283_v33, %v424_v56 }
 0x1d5   :  { %v608_v12 = vadd.f32 %v607_v43, %v464_v57  ;;  %v655_v1 = vmul.f32 0.2, %v613_v6 }
 0x1d6   :  { %v868_v44 = vpop.f32.mrf.mxu0 }
 0x1d7   :  { %v623_v62 = vadd.f32 %v868_v44, %v479_v45  ;;  %v654_v18 = vmul.f32 0.2, %v608_v12  ;;  %v671_v22 = vmax.f32 %v613_v6, %v655_v1  ;;  %v665_v44 = vmax.f32 %v583_v28, %v649_v40 }
 0x1d8   :  { %v617_v46 = vpop.f32.mrf.mxu0  ;;  %v646_v45 = vmul.f32 0.2, %v568_v34 }
 0x1d9   :  { %v618_v4 = vadd.f32 %v617_v46, %v474_v47  ;;  %v657_v10 = vmul.f32 0.2, %v623_v62  ;;  %v670_v26 = vmax.f32 %v608_v12, %v654_v18  ;;  %v663_v46 = vmax.f32 %v573_v38, %v647_v35  ;;  %v678_v47 = vld [vmem:[%s1322_s5] sm:$0x1]  ;;  %s936_s5 = scalar_lea.vmem %s763_s1, 16 }
 0x1da   :  { %v871_v48 = vpop.f32.mrf.mxu0  ;;  %v662_v33 = vmax.f32 %v568_v34, %v646_v45  ;;  %p937_p0 = scmp.ne.s32.totalorder %s763_s1, %s936_s5  ;;  %p942_p2 = scmp.lt.s32.totalorder %s940_s11, %s936_s5 }
 0x1db   :  { %v633_v54 = vadd.f32 %v871_v48, %v489_v41  ;;  %v656_v13 = vmul.f32 0.2, %v618_v4  ;;  %v673_v17 = vmax.f32 %v623_v62, %v657_v10  ;;  %v667_v41 = vmax.f32 %v593_v20, %v651_v29 }
 0x1dc   :  { %v627_v50 = vpop.f32.mrf.mxu0  ;;  %v680_v48 = vstv %s1323_s6  ;;  %p943_p3 = por %p942_p2, %p941_p1 }
 0x1dd   :  { %v628_v59 = vadd.f32 %v627_v50, %v484_v42  ;;  %v659_v63 = vmul.f32 0.2, %v633_v54  ;;  %v672_v19 = vmax.f32 %v618_v4, %v656_v13  ;;  %v648_v42 = vmul.f32 0.2, %v578_v36 }
 0x1de   :  { %v874_v53 = vpop.f32.mrf.mxu0  ;;  %p944_p4 = pnand %p943_p3, %p937_p0 }
 0x1df   :  { %v643_v55 = vadd.f32 %v874_v53, %v499_v37  ;;  %v658_v7 = vmul.f32 0.2, %v628_v59  ;;  %v675_v11 = vmax.f32 %v633_v54, %v659_v63  ;;  %v650_v37 = vmul.f32 0.2, %v588_v24 }
 0x1e0   :  { %v637_v58 = vpop.f32.mrf.mxu0  ;;  %v664_v32 = vmax.f32 %v578_v36, %v648_v42 }
 0x1e1   :  { %v661_v49 = vmul.f32 0.2, %v643_v55  ;;  %v638_v61 = vadd.f32 %v637_v58, %v494_v60  ;;  %v674_v14 = vmax.f32 %v628_v59, %v658_v7  ;;  %v668_v60 = vmax.f32 %v598_v5, %v652_v25 }
 0x1e2   :  { %v666_v43 = vmax.f32 %v588_v24, %v650_v37 }
 0x1e3   :  { %v660_v0 = vmul.f32 0.2, %v638_v61  ;;  %v677_v52 = vmax.f32 %v643_v55, %v661_v49 }
 0x1e5   :  { %v676_v8 = vmax.f32 %v638_v61, %v660_v0  ;;  %876 = vmatpush3.msra.mxu1 %v677_v52 }
 0x1e6   :  { %877 = vmatprep.subr.mxu1 %v960_v31 }
 0x1e7   :  { %878 = vmatpush3.msra.mxu1 %v676_v8 }
 0x1e8   :  { %879 = vmatprep.subr.mxu1 %v960_v31 }
 0x1e9   :  { %880 = vmatpush3.msra.mxu1 %v675_v11 }
 0x1ea   :  { %881 = vmatprep.subr.mxu1 %v960_v31 }
 0x1eb   :  { %882 = vmatpush3.msra.mxu1 %v674_v14 }
 0x1ec   :  { %883 = vmatprep.subr.mxu1 %v960_v31 }
 0x1ed   :  { %884 = vmatpush3.msra.mxu1 %v673_v17 }
 0x1ee   :  { %885 = vmatprep.subr.mxu1 %v960_v31 }
 0x1ef   :  { %886 = vmatpush3.msra.mxu1 %v672_v19 }
 0x1f0   :  { %887 = vmatprep.subr.mxu1 %v960_v31 }
 0x1f1   :  { %888 = vmatpush3.msra.mxu1 %v671_v22 }
 0x1f2   :  { %889 = vmatprep.subr.mxu1 %v960_v31 }
 0x1f3   :  { %890 = vmatpush3.msra.mxu1 %v670_v26 }
 0x1f4   :  { %891 = vmatprep.subr.mxu1 %v960_v31 }
 0x1f5   :  { %892 = vmatpush3.msra.mxu1 %v669_v30 }
 0x1f6   :  { %893 = vmatprep.subr.mxu1 %v960_v31 }
 0x1f7   :  { %894 = vmatpush3.msra.mxu1 %v668_v60 }
 0x1f8   :  { %895 = vmatprep.subr.mxu1 %v960_v31 }
 0x1f9   :  { %896 = vmatpush3.msra.mxu1 %v667_v41 }
 0x1fa   :  { %897 = vmatprep.subr.mxu1 %v960_v31 }
 0x1fb   :  { %898 = vmatpush3.msra.mxu1 %v666_v43 }
 0x1fc   :  { %899 = vmatprep.subr.mxu1 %v960_v31 }
 0x1fd   :  { %900 = vmatpush3.msra.mxu1 %v665_v44 }
 0x1fe   :  { %901 = vmatprep.subr.mxu1 %v960_v31 }
 0x1ff   :  { %902 = vmatpush3.msra.mxu1 %v664_v32 }
 0x200   :  { %903 = vmatprep.subr.mxu1 %v960_v31 }
 0x201   :  { %904 = vmatpush3.msra.mxu1 %v663_v46 }
 0x202   :  { %905 = vmatprep.subr.mxu1 %v960_v31 }
 0x203   :  { %906 = vmatpush3.msra.mxu1 %v662_v33 }
 0x204   :  { %908 = vmatmul.mubr.f32.vlgmr.msra.gmra.mxu1 %v678_v47 }
 0x2c4   :  { %v747_v50 = vpop.f32.mrf.mxu1 }
 0x2c5   :  { %v748_v51 = vadd.f32 %v747_v50, %v680_v48 }
 0x2c6   :  { %v909_v53 = vpop.f32.mrf.mxu1 }
 0x2c7   :  { %v751_v54 = vmul.f32 0.5, %v748_v51 }
 0x2c9   :  { %934 = vtanh.f32 %v751_v54 }
 0x2d6   :  { %v935_v55 = vpop.eup %934 }
 0x2d7   :  { %v753_v57 = vmul.f32 0.5, %v935_v55 }
 0x2d9   :  { %v754_v58 = vadd.f32 0.5, %v753_v57 }
 0x2db   :  { %755 = vst [vmem:[#allocation3] sm:$0x1] %v754_v58 }
 0x2dc   :  { %947 = shalt.err (!%p944_p4)
}
 0x2dd   :  { %765 = dma.vmem_to_hbm [thread:$0]  %s763_s1, 16, %s1324_s7, [#allocation4]  }
 0x2de   :  { %956 = dma.done.wait [#allocation4], 16  }
 0x2df   :  { %957 = vsyncadd [#allocation4], 4294967280 }
 0x2e0   :  { %769 = vsyncpa [#allocation4], 1 }

</bundles_post_ra>
